<compile_context>
chip_gen: v7x
topology: tpu7x:2x2x1
jax: 0.10.0
libtpu: 0.0.40
codegen_flags: <defaults>
</compile_context>

<pallas_src>
import math
import functools

import jax
import jax.numpy as jnp
from jax.experimental import pallas as pl
from jax.experimental.pallas import tpu as pltpu


# ------------------------------- the kernel ---------------------------------

def mha_kernel(x_ref, wq_ref, bq_ref, wk_ref, bk_ref, wv_ref, bv_ref,
               wo_ref, bo_ref, o_ref, *scratch, heads_per_group):
    """One grid step = one (TB, S, D) batch block x one group of TH heads."""
    # For f32 outputs we accumulate directly into the resident output block.
    acc_ref = scratch[0] if scratch else o_ref
    hg = pl.program_id(1)

    tb, s, d = x_ref.shape          # static block shape
    m = tb * s
    g = wq_ref.shape[-1]            # TH * dk
    th = heads_per_group
    dk = g // th

    # x was cast to bf16 once in the wrapper; just flatten batch rows.
    xb = x_ref[...].reshape(m, d)

    # Grouped projections: (M, D) @ (D, G) -> wide, lane-dense MXU tiles.
    # 1/sqrt(dk) is already folded into wq_ref / bq_ref.
    q = jnp.dot(xb, wq_ref[...], preferred_element_type=jnp.float32) + bq_ref[...]
    k = jnp.dot(xb, wk_ref[...], preferred_element_type=jnp.float32) + bk_ref[...]
    v = jnp.dot(xb, wv_ref[...], preferred_element_type=jnp.float32) + bv_ref[...]

    def to_heads(t):                # (M, G) f32 -> (TB*TH, S, dk) bf16
        t = t.reshape(tb, s, th, dk)
        t = jnp.transpose(t, (0, 2, 1, 3)).reshape(tb * th, s, dk)
        return t.astype(jnp.bfloat16)

    qh, kh, vh = to_heads(q), to_heads(k), to_heads(v)

    # Batched QK^T contracting the last axis of both (no explicit transpose).
    scores = jnp.einsum('bqd,bkd->bqk', qh, kh,
                        preferred_element_type=jnp.float32)     # (TB*TH,S,S) f32

    # Softmax in f32; divide via EUP approx reciprocal (separate unit slot).
    mx = jnp.max(scores, axis=-1, keepdims=True)
    e = jnp.exp(scores - mx)
    probs = e * pl.reciprocal(jnp.sum(e, axis=-1, keepdims=True), approx=True)

    ctx = jnp.einsum('bqk,bkd->bqd', probs.astype(jnp.bfloat16), vh,
                     preferred_element_type=jnp.float32)        # (TB*TH,S,dk)
    ctx = jnp.transpose(ctx.reshape(tb, th, s, dk), (0, 2, 1, 3)).reshape(m, g)

    # This head group's contribution through its W_o row block: (M,G) @ (G,D).
    head_out = jnp.dot(ctx.astype(jnp.bfloat16), wo_ref[...],
                       preferred_element_type=jnp.float32)      # (M, D) f32
    out3 = head_out.reshape(tb, s, d)

    @pl.when(hg == 0)
    def _():
        acc_ref[...] = out3.astype(acc_ref.dtype)

    @pl.when(hg > 0)
    def _():
        acc_ref[...] += out3.astype(acc_ref.dtype)

    @pl.when(hg == pl.num_programs(1) - 1)
    def _():
        # b_o added exactly once, at the final head group.
        o_ref[...] = (acc_ref[...].astype(jnp.float32)
                      + bo_ref[...]).astype(o_ref.dtype)


# ----------------------------- sizing heuristics ------------------------------

def _tpu_vmem_capacity_bytes():
    try:
        return int(pltpu.get_tpu_info().vmem_capacity_bytes)
    except Exception:
        return 64 * 1024 * 1024     # conservative (v7x-sized) fallback


def _pick_heads_per_group(num_heads, dk, target):
    # Smallest group with TH*dk >= target whose width is a lane-dense multiple
    # of 128; otherwise group all heads (block == full array -> always legal).
    for th in range(1, num_heads):
        g = th * dk
        if num_heads % th == 0 and g % 128 == 0 and g >= target:
            return th
    return num_heads


def _pick_block_b(B, S, D, G, TH, out_itemsize, need_scratch, vmem_budget,
                  force_two_blocks, max_rows):
    best = 1
    for tb in range(1, B + 1):
        if B % tb:
            continue
        if force_two_blocks and B >= 2 and B // tb < 2:
            continue                              # keep both v7x TCs busy
        if tb * S > max_rows:
            continue
        m = tb * S
        footprint = (
            2 * m * D * 2                         # x block (bf16, double-buffered)
            + 2 * m * D * out_itemsize            # out block (double-buffered)
            + (m * D * 4 if need_scratch else 0)  # f32 acc scratch (non-f32 out)
            + 2 * 4 * D * G * 2                   # wq/wk/wv/wo group blocks (bf16, x2)
            + 3 * m * G * 6                       # q/k/v f32 + bf16 copies
            + 2 * tb * TH * S * S * 4             # scores / probs f32
            + m * G * 4 + m * D * 4               # ctx + head_out
        )
        if footprint <= int(0.7 * vmem_budget):
            best = max(best, tb)
    return best


# -------------------------------- wrapper ------------------------------------

def multi_head_attention(x, params, num_heads, *, block_b=None,
                         heads_per_group=None):
    """params: wq/wk/wv/wo as (D_in, D_out) f32, bq/bk/bv/bo as (D,) f32."""
    B, S, D = x.shape
    assert D % num_heads == 0, "d_model must be divisible by num_heads"
    dk = D // num_heads

    # --- generation-aware VMEM budgeting ---
    vmem_cap = _tpu_vmem_capacity_bytes()
    vmem_budget = min(vmem_cap - 16 * 1024 * 1024, 100 * 1024 * 1024)
    vmem_budget = max(vmem_budget, 32 * 1024 * 1024)
    two_core_like = vmem_cap <= 64 * 1024 * 1024      # v7x: 2 TCs, 64 MiB VMEM

    if heads_per_group is None:
        heads_per_group = _pick_heads_per_group(num_heads, dk, target=256)
    assert num_heads % heads_per_group == 0
    th = heads_per_group
    g = th * dk
    ng = num_heads // th

    out_dtype = x.dtype
    need_scratch = out_dtype != jnp.float32
    out_itemsize = jnp.dtype(out_dtype).itemsize

    if block_b is None:
        block_b = _pick_block_b(B, S, D, g, th, out_itemsize, need_scratch,
                                vmem_budget,
                                force_two_blocks=two_core_like,
                                max_rows=512 if two_core_like else 1024)
    assert B % block_b == 0
    nb = B // block_b

    bf16, f32 = jnp.bfloat16, jnp.float32
    scale = 1.0 / math.sqrt(dk)

    # one-time wrapper-side prep: bf16 x + weights, 1/sqrt(dk) folded into W_q/b_q
    x_bf16 = x.astype(bf16)
    wq = (params["wq"].astype(f32) * scale).astype(bf16)
    bq = (params["bq"].astype(f32) * scale).reshape(1, D)
    wk = params["wk"].astype(bf16)
    bk = params["bk"].astype(f32).reshape(1, D)
    wv = params["wv"].astype(bf16)
    bv = params["bv"].astype(f32).reshape(1, D)
    wo = params["wo"].astype(bf16)
    bo = params["bo"].astype(f32).reshape(1, D)

    w_in_spec = pl.BlockSpec((D, g), lambda b, hg: (0, hg))   # column group of W_{q,k,v}
    b_in_spec = pl.BlockSpec((1, g), lambda b, hg: (0, hg))

    in_specs = [
        pl.BlockSpec((block_b, S, D), lambda b, hg: (b, 0, 0)),  # x (resident over hg)
        w_in_spec, b_in_spec,                                    # W_q, b_q (pre-scaled)
        w_in_spec, b_in_spec,                                    # W_k, b_k
        w_in_spec, b_in_spec,                                    # W_v, b_v
        pl.BlockSpec((g, D), lambda b, hg: (hg, 0)),             # W_o row group
        pl.BlockSpec((1, D), lambda b, hg: (0, 0)),              # b_o
    ]

    scratch_shapes = ([pltpu.VMEM((block_b, S, D), jnp.float32)]
                      if need_scratch else [])

    kernel = functools.partial(mha_kernel, heads_per_group=th)

    flops = 8 * B * S * D * D + 4 * B * S * S * D
    bytes_accessed = (B * S * D * 2                       # x read (bf16)
                      + B * S * D * out_itemsize          # out write
                      + nb * 4 * D * D * 2                # bf16 weights per batch block
                      + nb * ng * 4 * D * 4)              # biases
    cost = pl.CostEstimate(flops=flops,
                           transcendentals=B * num_heads * S * S,
                           bytes_accessed=bytes_accessed)

    return pl.pallas_call(
        kernel,
        out_shape=jax.ShapeDtypeStruct((B, S, D), out_dtype),
        grid_spec=pltpu.PrefetchScalarGridSpec(
            num_scalar_prefetch=0,
            grid=(nb, ng),
            in_specs=in_specs,
            out_specs=pl.BlockSpec((block_b, S, D), lambda b, hg: (b, 0, 0)),
            scratch_shapes=scratch_shapes,
        ),
        compiler_params=pltpu.CompilerParams(
            dimension_semantics=("parallel", "arbitrary"),
            vmem_limit_bytes=int(vmem_budget),
        ),
        cost_estimate=cost,
    )(x_bf16, wq, bq, wk, bk, wv, bv, wo, bo)


# ----------------------- pure-JAX reference (f32) ----------------------------

def mha_reference(x, p, num_heads):
    B, S, D = x.shape
    dk = D // num_heads
    hi = jax.lax.Precision.HIGHEST

    def lin(t, w, b):
        return jnp.einsum('bsd,df->bsf', t, w, precision=hi) + b

    q = lin(x, p["wq"], p["bq"])
    k = lin(x, p["wk"], p["bk"])
    v = lin(x, p["wv"], p["bv"])

    def heads(t):
        return jnp.transpose(t.reshape(B, S, num_heads, dk), (0, 2, 1, 3))

    qh, kh, vh = heads(q), heads(k), heads(v)
    scores = jnp.einsum('bhqd,bhkd->bhqk', qh, kh, precision=hi) / math.sqrt(dk)
    probs = jax.nn.softmax(scores, axis=-1)
    ctx = jnp.einsum('bhqk,bhkd->bhqd', probs, vh, precision=hi)
    ctx = jnp.transpose(ctx, (0, 2, 1, 3)).reshape(B, S, D)
    return jnp.einsum('bsd,df->bsf', ctx, p["wo"], precision=hi) + p["bo"]


# --------------------------- parameter creation -------------------------------

def init_params(key, d_model):
    ks = jax.random.split(key, 8)

    def lin(kw, kb, din, dout):
        # weights stored as (in, out) so the kernel computes x @ W + b
        w = jax.random.normal(kw, (din, dout), jnp.float32) * 0.02
        b = jax.random.normal(kb, (dout,), jnp.float32) * 0.02
        return w, b

    wq, bq = lin(ks[0], ks[1], d_model, d_model)
    wk, bk = lin(ks[2], ks[3], d_model, d_model)
    wv, bv = lin(ks[4], ks[5], d_model, d_model)
    wo, bo = lin(ks[6], ks[7], d_model, d_model)
    return dict(wq=wq, bq=bq, wk=wk, bk=bk, wv=wv, bv=bv, wo=wo, bo=bo)


# ----------------------------------- main --------------------------------------

if __name__ == "__main__":
    B, S, D = 2, 8, 32
    NUM_HEADS = 4          # d_model % num_heads == 0 -> d_k = 8

    key = jax.random.PRNGKey(0)
    kx, kp = jax.random.split(key)
    x = jax.random.normal(kx, (B, S, D), jnp.float32)
    params = init_params(kp, D)

    out = multi_head_attention(x, params, NUM_HEADS)
    out = jax.block_until_ready(out)

    assert out.shape == (B, S, D)
    assert bool(jnp.all(jnp.isfinite(out)))

    ref = mha_reference(x, params, NUM_HEADS)
    max_err = float(jnp.max(jnp.abs(out - ref)))
    assert max_err < 1e-2, f"max abs err vs f32 reference: {max_err}"

    print("KERNEL_OK")
</pallas_src>

<mosaic_0001>
module attributes {stable_mosaic.version = 11 : i64} {
  func.func @mha_kernel(%arg0: i32, %arg1: i32, %arg2: memref<1x8x32xbf16, #tpu.memory_space<vmem>>, %arg3: memref<32x32xbf16, #tpu.memory_space<vmem>>, %arg4: memref<1x32xf32, #tpu.memory_space<vmem>>, %arg5: memref<32x32xbf16, #tpu.memory_space<vmem>>, %arg6: memref<1x32xf32, #tpu.memory_space<vmem>>, %arg7: memref<32x32xbf16, #tpu.memory_space<vmem>>, %arg8: memref<1x32xf32, #tpu.memory_space<vmem>>, %arg9: memref<32x32xbf16, #tpu.memory_space<vmem>>, %arg10: memref<1x32xf32, #tpu.memory_space<vmem>>, %arg11: memref<1x8x32xf32, #tpu.memory_space<vmem>>) attributes {dimension_semantics = [#tpu.dimension_semantics<parallel>, #tpu.dimension_semantics<arbitrary>], iteration_bounds = array<i64: 2, 1>, scalar_prefetch = 0 : i64, scratch_operands = 0 : i64, tpu.core_type = #tpu.core_type<tc>, window_params = [{transform_indices = @transform_0, window_bounds = array<i64: 1, 8, 32>}, {transform_indices = @transform_1, window_bounds = array<i64: 32, 32>}, {transform_indices = @transform_2, window_bounds = array<i64: 1, 32>}, {transform_indices = @transform_3, window_bounds = array<i64: 32, 32>}, {transform_indices = @transform_4, window_bounds = array<i64: 1, 32>}, {transform_indices = @transform_5, window_bounds = array<i64: 32, 32>}, {transform_indices = @transform_6, window_bounds = array<i64: 1, 32>}, {transform_indices = @transform_7, window_bounds = array<i64: 32, 32>}, {pipeline_mode = #tpu.pipeline_mode<synchronous>, transform_indices = @transform_8, window_bounds = array<i64: 1, 32>}, {transform_indices = @transform_9, window_bounds = array<i64: 1, 8, 32>}]} {
    %c0 = arith.constant 0 : index
    %c0_0 = arith.constant 0 : index
    %c0_1 = arith.constant 0 : index
    %0 = vector.load %arg2[%c0, %c0_0, %c0_1] : memref<1x8x32xbf16, #tpu.memory_space<vmem>>, vector<1x8x32xbf16>
    %1 = vector.shape_cast %0 : vector<1x8x32xbf16> to vector<8x32xbf16>
    %c0_2 = arith.constant 0 : index
    %c0_3 = arith.constant 0 : index
    %2 = vector.load %arg3[%c0_2, %c0_3] : memref<32x32xbf16, #tpu.memory_space<vmem>>, vector<32x32xbf16>
    %cst = arith.constant dense<0.000000e+00> : vector<8x32xf32>
    %3 = tpu.matmul %1, %2, %cst {dimension_numbers = #tpu.dot_dimension_numbers<[1], [0], [0], [1], [0, 0, 1, 1], [], []>} : vector<8x32xbf16>, vector<32x32xbf16>, vector<8x32xf32> -> vector<8x32xf32>
    %c0_4 = arith.constant 0 : index
    %c0_5 = arith.constant 0 : index
    %4 = vector.load %arg4[%c0_4, %c0_5] : memref<1x32xf32, #tpu.memory_space<vmem>>, vector<1x32xf32>
    %5 = vector.broadcast %4 : vector<1x32xf32> to vector<8x32xf32>
    %6 = arith.addf %3, %5 : vector<8x32xf32>
    %c0_6 = arith.constant 0 : index
    %c0_7 = arith.constant 0 : index
    %7 = vector.load %arg5[%c0_6, %c0_7] : memref<32x32xbf16, #tpu.memory_space<vmem>>, vector<32x32xbf16>
    %cst_8 = arith.constant dense<0.000000e+00> : vector<8x32xf32>
    %8 = tpu.matmul %1, %7, %cst_8 {dimension_numbers = #tpu.dot_dimension_numbers<[1], [0], [0], [1], [0, 0, 1, 1], [], []>} : vector<8x32xbf16>, vector<32x32xbf16>, vector<8x32xf32> -> vector<8x32xf32>
    %c0_9 = arith.constant 0 : index
    %c0_10 = arith.constant 0 : index
    %9 = vector.load %arg6[%c0_9, %c0_10] : memref<1x32xf32, #tpu.memory_space<vmem>>, vector<1x32xf32>
    %10 = vector.broadcast %9 : vector<1x32xf32> to vector<8x32xf32>
    %11 = arith.addf %8, %10 : vector<8x32xf32>
    %c0_11 = arith.constant 0 : index
    %c0_12 = arith.constant 0 : index
    %12 = vector.load %arg7[%c0_11, %c0_12] : memref<32x32xbf16, #tpu.memory_space<vmem>>, vector<32x32xbf16>
    %cst_13 = arith.constant dense<0.000000e+00> : vector<8x32xf32>
    %13 = tpu.matmul %1, %12, %cst_13 {dimension_numbers = #tpu.dot_dimension_numbers<[1], [0], [0], [1], [0, 0, 1, 1], [], []>} : vector<8x32xbf16>, vector<32x32xbf16>, vector<8x32xf32> -> vector<8x32xf32>
    %c0_14 = arith.constant 0 : index
    %c0_15 = arith.constant 0 : index
    %14 = vector.load %arg8[%c0_14, %c0_15] : memref<1x32xf32, #tpu.memory_space<vmem>>, vector<1x32xf32>
    %15 = vector.broadcast %14 : vector<1x32xf32> to vector<8x32xf32>
    %16 = arith.addf %13, %15 : vector<8x32xf32>
    %17 = vector.shape_cast %6 : vector<8x32xf32> to vector<1x8x4x8xf32>
    %18 = tpu.transpose %17, [0, 2, 1, 3] : vector<1x8x4x8xf32> -> vector<1x4x8x8xf32>
    %19 = vector.shape_cast %18 : vector<1x4x8x8xf32> to vector<4x8x8xf32>
    %20 = arith.truncf %19 : vector<4x8x8xf32> to vector<4x8x8xbf16>
    %21 = vector.shape_cast %11 : vector<8x32xf32> to vector<1x8x4x8xf32>
    %22 = tpu.transpose %21, [0, 2, 1, 3] : vector<1x8x4x8xf32> -> vector<1x4x8x8xf32>
    %23 = vector.shape_cast %22 : vector<1x4x8x8xf32> to vector<4x8x8xf32>
    %24 = arith.truncf %23 : vector<4x8x8xf32> to vector<4x8x8xbf16>
    %25 = vector.shape_cast %16 : vector<8x32xf32> to vector<1x8x4x8xf32>
    %26 = tpu.transpose %25, [0, 2, 1, 3] : vector<1x8x4x8xf32> -> vector<1x4x8x8xf32>
    %27 = vector.shape_cast %26 : vector<1x4x8x8xf32> to vector<4x8x8xf32>
    %28 = arith.truncf %27 : vector<4x8x8xf32> to vector<4x8x8xbf16>
    "tpu.trace_start"() <{level = 10 : i32, message = "bqd,bkd->bqk"}> : () -> ()
    %cst_16 = arith.constant dense<0.000000e+00> : vector<4x8x8xf32>
    %29 = tpu.matmul %20, %24, %cst_16 {dimension_numbers = #tpu.dot_dimension_numbers<[2], [2], [1], [1], [0, 0, 0, 1, 1, 1], [0], [0]>} : vector<4x8x8xbf16>, vector<4x8x8xbf16>, vector<4x8x8xf32> -> vector<4x8x8xf32>
    "tpu.trace_stop"() : () -> ()
    %cst_17 = arith.constant dense<0xFF800000> : vector<4x8xf32>
    %30 = vector.multi_reduction <maximumf>, %29, %cst_17 [2] : vector<4x8x8xf32> to vector<4x8xf32>
    %31 = vector.shape_cast %30 : vector<4x8xf32> to vector<4x8x1xf32>
    %32 = vector.broadcast %31 : vector<4x8x1xf32> to vector<4x8x8xf32>
    %33 = arith.subf %29, %32 : vector<4x8x8xf32>
    %34 = math.exp %33 : vector<4x8x8xf32>
    %cst_18 = arith.constant dense<0.000000e+00> : vector<4x8xf32>
    %35 = vector.multi_reduction <add>, %34, %cst_18 [2] : vector<4x8x8xf32> to vector<4x8xf32>
    %36 = vector.shape_cast %35 : vector<4x8xf32> to vector<4x8x1xf32>
    %37 = tpu.reciprocal %36 {approx = true} : vector<4x8x1xf32> -> vector<4x8x1xf32>
    %38 = vector.broadcast %37 : vector<4x8x1xf32> to vector<4x8x8xf32>
    %39 = arith.mulf %34, %38 : vector<4x8x8xf32>
    %40 = arith.truncf %39 : vector<4x8x8xf32> to vector<4x8x8xbf16>
    "tpu.trace_start"() <{level = 10 : i32, message = "bqk,bkd->bqd"}> : () -> ()
    %cst_19 = arith.constant dense<0.000000e+00> : vector<4x8x8xf32>
    %41 = tpu.matmul %40, %28, %cst_19 {dimension_numbers = #tpu.dot_dimension_numbers<[2], [1], [1], [2], [0, 0, 0, 1, 1, 2], [0], [0]>} : vector<4x8x8xbf16>, vector<4x8x8xbf16>, vector<4x8x8xf32> -> vector<4x8x8xf32>
    "tpu.trace_stop"() : () -> ()
    %42 = vector.shape_cast %41 : vector<4x8x8xf32> to vector<1x4x8x8xf32>
    %43 = tpu.transpose %42, [0, 2, 1, 3] : vector<1x4x8x8xf32> -> vector<1x8x4x8xf32>
    %44 = vector.shape_cast %43 : vector<1x8x4x8xf32> to vector<8x32xf32>
    %45 = arith.truncf %44 : vector<8x32xf32> to vector<8x32xbf16>
    %c0_20 = arith.constant 0 : index
    %c0_21 = arith.constant 0 : index
    %46 = vector.load %arg9[%c0_20, %c0_21] : memref<32x32xbf16, #tpu.memory_space<vmem>>, vector<32x32xbf16>
    %cst_22 = arith.constant dense<0.000000e+00> : vector<8x32xf32>
    %47 = tpu.matmul %45, %46, %cst_22 {dimension_numbers = #tpu.dot_dimension_numbers<[1], [0], [0], [1], [0, 0, 1, 1], [], []>} : vector<8x32xbf16>, vector<32x32xbf16>, vector<8x32xf32> -> vector<8x32xf32>
    %48 = vector.shape_cast %47 : vector<8x32xf32> to vector<1x8x32xf32>
    %c0_i32 = arith.constant 0 : i32
    %49 = arith.cmpi eq, %arg1, %c0_i32 : i32
    %50 = arith.extui %49 : i1 to i32
    %c0_i32_23 = arith.constant 0 : i32
    %51 = arith.cmpi ne, %50, %c0_i32_23 : i32
    scf.if %51 {
      %c0_28 = arith.constant 0 : index
      %c0_29 = arith.constant 0 : index
      %c0_30 = arith.constant 0 : index
      %58 = vector.load %arg11[%c0_28, %c0_29, %c0_30] : memref<1x8x32xf32, #tpu.memory_space<vmem>>, vector<1x8x32xf32>
      tpu.vector_store %arg11[%c0_28, %c0_29, %c0_30], %48 {strides = array<i32>} : memref<1x8x32xf32, #tpu.memory_space<vmem>>, vector<1x8x32xf32>,
    } else {
    }
    %c0_i32_24 = arith.constant 0 : i32
    %52 = arith.cmpi sgt, %arg1, %c0_i32_24 : i32
    %53 = arith.extui %52 : i1 to i32
    %c0_i32_25 = arith.constant 0 : i32
    %54 = arith.cmpi ne, %53, %c0_i32_25 : i32
    scf.if %54 {
      %c0_28 = arith.constant 0 : index
      %c0_29 = arith.constant 0 : index
      %c0_30 = arith.constant 0 : index
      %58 = vector.load %arg11[%c0_28, %c0_29, %c0_30] : memref<1x8x32xf32, #tpu.memory_space<vmem>>, vector<1x8x32xf32>
      %59 = arith.addf %58, %48 : vector<1x8x32xf32>
      %c0_31 = arith.constant 0 : index
      %c0_32 = arith.constant 0 : index
      %c0_33 = arith.constant 0 : index
      %60 = vector.load %arg11[%c0_31, %c0_32, %c0_33] : memref<1x8x32xf32, #tpu.memory_space<vmem>>, vector<1x8x32xf32>
      tpu.vector_store %arg11[%c0_31, %c0_32, %c0_33], %59 {strides = array<i32>} : memref<1x8x32xf32, #tpu.memory_space<vmem>>, vector<1x8x32xf32>,
    } else {
    }
    %c0_i32_26 = arith.constant 0 : i32
    %55 = arith.cmpi eq, %arg1, %c0_i32_26 : i32
    %56 = arith.extui %55 : i1 to i32
    %c0_i32_27 = arith.constant 0 : i32
    %57 = arith.cmpi ne, %56, %c0_i32_27 : i32
    scf.if %57 {
      %c0_28 = arith.constant 0 : index
      %c0_29 = arith.constant 0 : index
      %c0_30 = arith.constant 0 : index
      %58 = vector.load %arg11[%c0_28, %c0_29, %c0_30] : memref<1x8x32xf32, #tpu.memory_space<vmem>>, vector<1x8x32xf32>
      %c0_31 = arith.constant 0 : index
      %c0_32 = arith.constant 0 : index
      %59 = vector.load %arg10[%c0_31, %c0_32] : memref<1x32xf32, #tpu.memory_space<vmem>>, vector<1x32xf32>
      %60 = vector.shape_cast %59 : vector<1x32xf32> to vector<1x1x32xf32>
      %61 = vector.broadcast %60 : vector<1x1x32xf32> to vector<1x8x32xf32>
      %62 = arith.addf %58, %61 : vector<1x8x32xf32>
      %c0_33 = arith.constant 0 : index
      %c0_34 = arith.constant 0 : index
      %c0_35 = arith.constant 0 : index
      %63 = vector.load %arg11[%c0_33, %c0_34, %c0_35] : memref<1x8x32xf32, #tpu.memory_space<vmem>>, vector<1x8x32xf32>
      tpu.vector_store %arg11[%c0_33, %c0_34, %c0_35], %62 {strides = array<i32>} : memref<1x8x32xf32, #tpu.memory_space<vmem>>, vector<1x8x32xf32>,
    } else {
    }
    return
  }
  func.func @transform_0(%arg0: i32, %arg1: i32) -> (i32, i32, i32) {
    %c0_i32 = arith.constant 0 : i32
    %c0_i32_0 = arith.constant 0 : i32
    %c0_i32_1 = arith.constant 0 : i32
    return %arg0, %c0_i32, %c0_i32_0 : i32, i32, i32
  }
  func.func @transform_1(%arg0: i32, %arg1: i32) -> (i32, i32) {
    %c0_i32 = arith.constant 0 : i32
    %c0_i32_0 = arith.constant 0 : i32
    return %c0_i32, %arg1 : i32, i32
  }
  func.func @transform_2(%arg0: i32, %arg1: i32) -> (i32, i32) {
    %c0_i32 = arith.constant 0 : i32
    %c0_i32_0 = arith.constant 0 : i32
    return %c0_i32, %arg1 : i32, i32
  }
  func.func @transform_3(%arg0: i32, %arg1: i32) -> (i32, i32) {
    %c0_i32 = arith.constant 0 : i32
    %c0_i32_0 = arith.constant 0 : i32
    return %c0_i32, %arg1 : i32, i32
  }
  func.func @transform_4(%arg0: i32, %arg1: i32) -> (i32, i32) {
    %c0_i32 = arith.constant 0 : i32
    %c0_i32_0 = arith.constant 0 : i32
    return %c0_i32, %arg1 : i32, i32
  }
  func.func @transform_5(%arg0: i32, %arg1: i32) -> (i32, i32) {
    %c0_i32 = arith.constant 0 : i32
    %c0_i32_0 = arith.constant 0 : i32
    return %c0_i32, %arg1 : i32, i32
  }
  func.func @transform_6(%arg0: i32, %arg1: i32) -> (i32, i32) {
    %c0_i32 = arith.constant 0 : i32
    %c0_i32_0 = arith.constant 0 : i32
    return %c0_i32, %arg1 : i32, i32
  }
  func.func @transform_7(%arg0: i32, %arg1: i32) -> (i32, i32) {
    %c0_i32 = arith.constant 0 : i32
    %c0_i32_0 = arith.constant 0 : i32
    return %arg1, %c0_i32 : i32, i32
  }
  func.func @transform_8(%arg0: i32, %arg1: i32) -> (i32, i32) {
    %c0_i32 = arith.constant 0 : i32
    %c0_i32_0 = arith.constant 0 : i32
    %c0_i32_1 = arith.constant 0 : i32
    return %c0_i32, %c0_i32_0 : i32, i32
  }
  func.func @transform_9(%arg0: i32, %arg1: i32) -> (i32, i32, i32) {
    %c0_i32 = arith.constant 0 : i32
    %c0_i32_0 = arith.constant 0 : i32
    %c0_i32_1 = arith.constant 0 : i32
    return %arg0, %c0_i32, %c0_i32_0 : i32, i32, i32
  }
}

</mosaic_0001>

<bundles_post_ra>
// kernel: tpu_custom_call.1
= control target key start
LH: loop header
LB: loop body
LE: loop exit
PB: predicated region body
PF: predicated region fallthrough
CT: control target
= control target key end

     0   :  { %s2997_s0 = inlined_call_operand.hbm [shape: bf16[2,8,32], index: 0, kind: input, shape index: {}]   ;;  %s2998_s1 = inlined_call_operand.hbm [shape: bf16[32,32], index: 1, kind: input, shape index: {}]   ;;  %s2999_s2 = inlined_call_operand.vmem [shape: f32[1,32], index: 2, kind: input, shape index: {}]   ;;  %s3000_s3 = inlined_call_operand.hbm [shape: bf16[32,32], index: 3, kind: input, shape index: {}]   ;;  %s3001_s4 = inlined_call_operand.vmem [shape: f32[1,32], index: 4, kind: input, shape index: {}]   ;;  %s3002_s5 = inlined_call_operand.vmem [shape: bf16[32,32], index: 5, kind: input, shape index: {}]   ;;  %s3003_s6 = inlined_call_operand.vmem [shape: f32[1,32], index: 6, kind: input, shape index: {}]   ;;  %s3004_s7 = inlined_call_operand.hbm [shape: bf16[32,32], index: 7, kind: input, shape index: {}]   ;;  %s3005_s8 = inlined_call_operand.vmem [shape: f32[1,32], index: 8, kind: input, shape index: {}]   ;;  %s3006_s9 = inlined_call_operand.hbm [shape: f32[2,8,32], index: 9, kind: output, shape index: {}]  }
   0x1   :  { %3014 = sst [smem:[#allocation18_spill]] %s3003_s6 }
   0x2   :  { %3015 = sst [smem:[#allocation19_spill]] %s3005_s8 }
   0x3   :  { %3016 = sst [smem:[#allocation20_spill]] %s3006_s9 }
   0x4   :  { %14 = vsyncpa [#allocation3], 0 }
   0x5   :  { %16 = vsyncpa [#allocation3 + $0x1], 0 }
   0x6   :  { %17 = vsyncpa [#allocation6], 0 }
   0x7   :  { %18 = vsyncpa [#allocation9], 0 }
   0x8   :  { %19 = vsyncpa [#allocation4], 0 }
   0x9   :  { %21 = vsyncpa [#allocation4 + $0x1], 0  ;;  %s2530_s30 = smov 0   ;;  %s2532_s10 = smov 0  }
   0xa   :  { %s2534_s11 = smov 0   ;;  %s2536_s12 = smov 0  }
   0xb   :  { %s2538_s13 = smov 0   ;;  %s2540_s14 = smov 0  }
   0xc LB: > { %3017 = sst [smem:[#allocation15_spill]] %s2441_s30  ;;  %s1965_s15 = sadd.s32 4294967295, %s2461_s14   ;;  %s2461_s14 = sphi %s2540_s14, %s27_s14   ;;  %s2457_s13 = sphi %s2538_s13, %s3045_s13   ;;  %s2453_s12 = sphi %s2536_s12, %s3044_s12   ;;  %s2449_s11 = sphi %s2534_s11, %s3043_s11   ;;  %s2445_s10 = sphi %s2532_s10, %s3042_s10   ;;  %s2441_s30 = sphi %s2530_s30, %s3041_s30  }
   0xd   : > { %3018 = sst [smem:[#allocation16_spill]] %s2453_s12  ;;  %s1966_s16 = sadd.s32 4294967294, %s2461_s14  }
   0xe   : > { %p59_p0 = scmp.ne.s32.totalorder %s2445_s10, %s2441_s30  ;;  %p2564_p1 = scmp.eq.s32.totalorder %s1965_s15, 0 }
   0xf   : > { %p2568_p2 = scmp.eq.s32.totalorder %s1965_s15, 1  ;;  %p292_p3 = scmp.eq.s32.totalorder %s1966_s16, 1 }
  0x10   : > { %s3019_s17 = scalar_select %p2564_p1, 1, 0 }
  0x11   : > { %s3020_s18 = scalar_select %p2568_p2, 1, 0 }
  0x12   : > { %p2574_p4 = por %p2564_p1, %p59_p0  ;;  %p1967_p5 = scmp.ge.s32.totalorder %s2461_s14, 1 }
  0x13   : > { %p2579_p6 = por %p292_p3, %p59_p0  ;;  %p299_p7 = scmp.lt.s32.totalorder %s2461_s14, 3 }
  0x14   : > { %s3021_s19 = scalar_select %p2574_p4, 1, 0 }
  0x15   : > { %s3022_s20 = scalar_select %p2579_p6, 1, 0 }
  0x16   : > { %p2584_p8 = pnand %p1967_p5, %p299_p7  ;;  %s2463_s22 = smov [#allocation5]  }
  0x17   : > { %3023 = sst [smem:[#allocation17_spill]] %s3022_s20  ;;  %s313_s23 = sshll.u32 %s2463_s22, 4  ;;  %s2588_s23 = int_to_ptr.vmem [resolvable:$true] %s313_s23 }
  0x18   : > { %s3024_s21 = scalar_select %p2584_p8, 1, 0 }
  0x19   : > { %p2144_p9 = pneg %p2584_p8  ;;  %s2464_s25 = smov [#allocation7]  }
  0x1a   : > { %s334_s26 = sshll.u32 %s2464_s25, 4  ;;  %s2465_s27 = smov [#allocation8]   ;;  %s2599_s26 = int_to_ptr.vmem [resolvable:$true] %s334_s26 }
  0x1b   : > { %p2595_p11 = pnand %p2144_p9, %p2564_p1  ;;  %s2601_s28 = sshll.u32 %s2465_s27, 4  ;;  %s370_s28 = int_to_ptr.vmem [resolvable:$true] %s2601_s28 }
  0x1c   : > { %s2257_s16 = scalar_lea.hbm %s2998_s1, 256 }
  0x1d   : > { %p2258_p12 = scmp.ne.s32.totalorder %s2998_s1, %s2257_s16  ;;  %p2611_p13 = pneg %p2595_p11 }
  0x1e   : > { %p2264_p5 = scmp.lt.u32.totalorder %s2257_s16, %s2998_s1 }
  0x1f   : > { %p2260_p0 = pnand %p2611_p13, %p2258_p12 }
  0x21   : > { %p2261_p3 = pneg %p2260_p0 }
  0x23   : > { %p2266_p7 = pnand %p2264_p5, %p2261_p3 }
  0x25   : > { %2269 = shalt.err (!%p2266_p7)
}
  0x26   : > { %s2270_s20 = scalar_lea.vmem %s2588_s23, 256  ;;  %p2278_p1 = scmp.lt.s32.totalorder %s2588_s23, %s2588_s23 }
  0x27   : > { %p2271_p9 = scmp.ne.s32.totalorder %s2588_s23, %s2270_s20  ;;  %p2279_p4 = scmp.lt.s32.totalorder %s2270_s20, %s2270_s20 }
  0x29   : > { %p2273_p10 = pnand %p2271_p9, %p2611_p13  ;;  %p2280_p12 = por %p2279_p4, %p2278_p1 }
  0x2b   : > { %p2274_p6 = pneg %p2273_p10 }
  0x2d   : > { %p2281_p0 = pnand %p2280_p12, %p2274_p6 }
  0x2f   : > { %2284 = shalt.err (!%p2281_p0)
}
  0x30   : > { %s2466_s29 = smov 64   ;;  %s2467_s15 = smov 4  }
  0x31   : > { %2147 = dma.hbm_to_vmem [thread:$0]  (!%p2595_p11), %s2998_s1, 256, %s2588_s23, [#allocation6], %s2466_s29, %s2466_s29, %s2467_s15  }
  0x32   : > { %s2285_s20 = scalar_lea.hbm %s3000_s3, 256 }
  0x33   : > { %p2286_p1 = scmp.ne.s32.totalorder %s3000_s3, %s2285_s20  ;;  %p2292_p10 = scmp.lt.u32.totalorder %s2285_s20, %s3000_s3 }
  0x35   : > { %p2288_p4 = pnand %p2286_p1, %p2611_p13 }
  0x37   : > { %p2289_p6 = pneg %p2288_p4 }
  0x39   : > { %p2294_p3 = pnand %p2292_p10, %p2289_p6 }
  0x3b   : > { %2297 = shalt.err (!%p2294_p3)
}
  0x3c   : > { %s2298_s23 = scalar_lea.vmem %s2599_s26, 256  ;;  %p2306_p12 = scmp.lt.s32.totalorder %s2599_s26, %s2599_s26 }
  0x3d   : > { %p2299_p5 = scmp.ne.s32.totalorder %s2599_s26, %s2298_s23  ;;  %p2307_p0 = scmp.lt.s32.totalorder %s2298_s23, %s2298_s23 }
  0x3f   : > { %p2301_p7 = pnand %p2299_p5, %p2611_p13  ;;  %p2308_p1 = por %p2307_p0, %p2306_p12 }
  0x41   : > { %p2302_p9 = pneg %p2301_p7 }
  0x43   : > { %p2309_p4 = pnand %p2308_p1, %p2302_p9 }
  0x45   : > { %2312 = shalt.err (!%p2309_p4)
}
  0x46   : > { %2150 = dma.hbm_to_vmem [thread:$0]  (!%p2595_p11), %s3000_s3, 256, %s2599_s26, [#allocation6], %s2466_s29, %s2466_s29, %s2467_s15  }
  0x47   : > { %s2313_s16 = scalar_lea.hbm %s3004_s7, 256 }
  0x48   : > { %p2314_p6 = scmp.ne.s32.totalorder %s3004_s7, %s2313_s16  ;;  %p2320_p5 = scmp.lt.u32.totalorder %s2313_s16, %s3004_s7 }
  0x4a   : > { %p2316_p10 = pnand %p2314_p6, %p2611_p13 }
  0x4c   : > { %p2317_p3 = pneg %p2316_p10 }
  0x4e   : > { %p2322_p7 = pnand %p2320_p5, %p2317_p3 }
  0x50   : > { %2325 = shalt.err (!%p2322_p7)
}
  0x51   : > { %s2326_s23 = scalar_lea.vmem %s370_s28, 256  ;;  %p2334_p1 = scmp.lt.s32.totalorder %s370_s28, %s370_s28 }
  0x52   : > { %p2327_p9 = scmp.ne.s32.totalorder %s370_s28, %s2326_s23  ;;  %p2335_p4 = scmp.lt.s32.totalorder %s2326_s23, %s2326_s23 }
  0x54   : > { %p2329_p12 = pnand %p2327_p9, %p2611_p13  ;;  %p2336_p8 = por %p2335_p4, %p2334_p1 }
  0x56   : > { %p2330_p0 = pneg %p2329_p12 }
  0x58   : > { %p2337_p2 = pnand %p2336_p8, %p2330_p0 }
  0x5a   : > { %2340 = shalt.err (!%p2337_p2)
}
  0x5b   : > { %2153 = dma.hbm_to_vmem [thread:$0]  (!%p2595_p11), %s3004_s7, 256, %s370_s28, [#allocation9], %s2466_s29, %s2466_s29, %s2467_s15  }
  0x5c   : > { %s46_s30 = sadd.s32 1, %s2449_s11  ;;  %s39_s24 = sadd.s32 1, %s2457_s13 }
  0x5d   : > { %p53_p2 = scmp.ne.s32.totalorder %s2449_s11, %s2445_s10  ;;  %p41_p8 = scmp.ge.s32.totalorder %s39_s24, 2 }
  0x5e   : > { %p54_p13 = scmp.eq.s32.totalorder %s2461_s14, 0  ;;  %p3027_p6 = scmp.ne.s32.totalorder %s3020_s18, 0 }
  0x5f   : > { %p2165_p3 = scmp.lt.s32.totalorder %s2461_s14, 2  ;;  %s3047_s24 = smov (%p41_p8, %s39_s24), 0 }
  0x60   : > { %p2690_p10 = por %p3027_p6, %p53_p2  ;;  %p55_p5 = por %p54_p13, %p53_p2 }
  0x61   : > { %s386_s9 = sand.u32 1, %s2449_s11   ;;  %s43_s12 = ssub.s32 %s2457_s13, %s3047_s24 }
  0x62   : > { %p44_p7 = scmp.eq.s32.totalorder %s43_s12, 0  ;;  %s1976_s28 = sshll.u32 %s386_s9, 2 }
  0x63   : > { %s1977_s29 = sshll.u32 %s2457_s13, 6  ;;  %s390_s25 = scalar_lea.vmem [#allocation2], %s1976_s28 }
  0x64   : > { %s2702_s15 = scalar_select %p44_p7, %s2449_s11, %s46_s30  }
  0x65   : > { %s2707_s18 = scalar_lea.hbm %s2997_s0, %s1977_s29  ;;  %s397_s27 = sshll.u32 %s390_s25, 4  ;;  %s2709_s27 = int_to_ptr.vmem [resolvable:$true] %s397_s27 }
  0x66   : > { %p2713_p11 = pnand %p2165_p3, %p55_p5  ;;  %s387_s23 = scalar_lea.sflag [#allocation3], %s386_s9 }
  0x67   : > { %s2341_s26 = scalar_lea.hbm %s2707_s18, 64  ;;  %s2346_s12 = scalar_lea.hbm %s2997_s0, 128 }
  0x68   : > { %p2342_p9 = scmp.ne.s32.totalorder %s2707_s18, %s2341_s26  ;;  %p2343_p12 = pneg %p2713_p11 }
  0x69   : > { %p2347_p4 = scmp.lt.u32.totalorder %s2707_s18, %s2997_s0  ;;  %p2348_p2 = scmp.lt.u32.totalorder %s2346_s12, %s2341_s26 }
  0x6a   : > { %p2344_p0 = pnand %p2343_p12, %p2342_p9  ;;  %p2350_p13 = scmp.lt.u32.totalorder %s2341_s26, %s2707_s18 }
  0x6b   : > { %p2349_p8 = por %p2348_p2, %p2347_p4 }
  0x6c   : > { %p2345_p1 = pneg %p2344_p0 }
  0x6d   : > { %p2351_p6 = por %p2350_p13, %p2349_p8 }
  0x6f   : > { %p2352_p3 = pnand %p2351_p6, %p2345_p1 }
  0x71   : > { %2355 = shalt.err (!%p2352_p3)
}
  0x72   : > { %s2356_s9 = scalar_lea.vmem %s2709_s27, 64  ;;  %s2468_s16 = smov [#allocation2]  }
  0x73   : > { %p2357_p5 = scmp.ne.s32.totalorder %s2709_s27, %s2356_s9  ;;  %s2361_s22 = sshll.u32 %s2468_s16, 4  ;;  %s2362_s22 = int_to_ptr.vmem [resolvable:$false] %s2361_s22 }
  0x74   : > { %s2363_s25 = scalar_lea.vmem %s2362_s22, 128  ;;  %p2364_p0 = scmp.lt.s32.totalorder %s2709_s27, %s2362_s22 }
  0x75   : > { %p2359_p7 = pnand %p2357_p5, %p2343_p12  ;;  %p2365_p4 = scmp.lt.s32.totalorder %s2363_s25, %s2356_s9 }
  0x77   : > { %p2360_p9 = pneg %p2359_p7  ;;  %p2366_p2 = por %p2365_p4, %p2364_p0 }
  0x79   : > { %p2367_p8 = pnand %p2366_p2, %p2360_p9 }
  0x7b   : > { %2370 = shalt.err (!%p2367_p8)
}
  0x7c   : > { %2157 = dma.hbm_to_vmem [thread:$0]  (!%p2713_p11), %s2707_s18, 64, %s2709_s27, %s387_s23  }
  0x7d   : > { %p3030_p1 = scmp.ne.s32.totalorder %s3024_s21, 0 }
  0x7e   : > { %s2745_s26 = sand.u32 (!%p3030_p1), 1, %s2445_s10   ;;  %p3031_p12 = scmp.ne.s32.totalorder (!%p3030_p1), %s3021_s19, 0 }
  0x7f   : > { %406 = sbr.rel (%p3030_p1) target bundleno = 1681 (0x691), region = 56  ;;  %s1979_s6 = sshll.u32 (!%p3030_p1), %s2745_s26, 2 }
  0x80   : > { %s409_s30 = scalar_lea.sflag (!%p3030_p1), [#allocation3], %s2745_s26  ;;  %s412_s12 = scalar_lea.vmem (!%p3030_p1), [#allocation2], %s1979_s6 }
  0x86   : > { %2424 = dma.done.wait (%p3031_p12), %s409_s30, 64  }
  0x87   : > { %2426 = vsyncadd (%p3031_p12), %s409_s30, 4294967232  ;;  %p3032_p13 = scmp.ne.s32.totalorder %s3019_s17, 0 }
  0x89   : > { %2428 = dma.done.wait (%p3032_p13), [#allocation6], 512  }
  0x8a   : > { %2430 = vsyncadd (%p3032_p13), [#allocation6], 4294966784 }
  0x8b   : > { %2432 = dma.done.wait (%p3032_p13), [#allocation9], 256  }
  0x8c   : > { %2434 = vsyncadd (%p3032_p13), [#allocation9], 4294967040  ;;  %v2469_v0 = vmov 0.0   ;;  %vm2470_vm0 = vmmov 0   ;;  %v2233_v1 = vld [vmem:[#allocation7] sm:$0xff]   ;;  %v2234_v2 = vld [vmem:[#allocation5] sm:$0xff]   ;;  %v696_v22 = vlaneseq }
  0x8d   : > { %2056 = vmatprep.subr.bf16.mxu1 %v2469_v0  ;;  %2048 = vmatprep.subr.bf16.mxu0 %v2469_v0  ;;  %v2235_v3 = vld [vmem:[#allocation7 + $0x8] sm:$0xff]   ;;  %vm511_vm1 = vcmask 261120   ;;  %v2236_v5 = vld [vmem:[#allocation5 + $0x8] sm:$0xff]   ;;  %s2471_s23 = smov 104   ;;  %s2472_s28 = smov 120   ;;  %v2238_v19 = vld [vmem:[%s3002_s5 + $0x8] sm:$0xff]  }
  0x8e   : > { %2060 = vmatprep.mubr.msk.bf16.mxu1 %vm2470_vm0, %v2469_v0  ;;  %2052 = vmatprep.mubr.msk.bf16.mxu0 %vm2470_vm0, %v2469_v0  ;;  %v487_v4 = vld [vmem:[%s412_s12] sm:$0xf]  ;;  %v1988_v6 = vld [vmem:[%s3001_s4] ss:$0 sm:$0xff]  ;;  %s2473_s16 = smov 112   ;;  %v697_v26 = vshrl.u32 %v696_v22, 7 }
  0x8f   : > { %2057 = vmatpush3.bf16.msra.mxu1 %v2233_v1  ;;  %2049 = vmatpush3.bf16.msra.mxu0 %v2234_v2  ;;  %v1984_v8 = vld [vmem:[%s2999_s2] ss:$0 sm:$0xff]  ;;  %v2474_v20 = vmov 1983009808   ;;  %v2475_v23 = vmov 1934713408  }
  0x90   : > { %2058 = vmatprep.subr.bf16.mxu1 %v2469_v0  ;;  %2050 = vmatprep.subr.bf16.mxu0 %v2469_v0  ;;  %v2237_v12 = vld [vmem:[%s3002_s5] sm:$0xff]   ;;  %v694_v21 = vunpack.c.l.s4 %v2474_v20  ;;  %v726_v24 = vunpack.c.l.s4 %v2475_v23  ;;  %vm1131_vm2 = vcmask 64512   ;;  %s3033_s6 = sld [smem:[#allocation18_spill]]  ;;  %vm1367_vm3 = vcmask 1043456   ;;  %s2476_s30 = smov 16  }
  0x91   : > { %s2477_s12 = smov 8   ;;  %s2478_s17 = smov 24   ;;  %vm1698_vm4 = vcmask 130048   ;;  %vm1700_vm5 = vcmask 195584  }
  0x92   : > { %v695_v25 = vunpack.c.0.s8 %v694_v21  ;;  %v727_v29 = vunpack.c.0.s8 %v726_v24  ;;  %s3034_s19 = sld [smem:[#allocation16_spill]]  ;;  %s1983_s21 = sshll.u32 %s2745_s26, 3 }
  0x93   : > { %2059 = vmatpush3.bf16.msra.mxu1 %v2235_v3  ;;  %2051 = vmatpush3.bf16.msra.mxu0 %v2236_v5  ;;  %s471_s18 = scalar_lea.vmem [#allocation10], %s1983_s21  ;;  %s3036_s22 = sld [smem:[#allocation20_spill]] }
  0x94   : > { %2072 = vmatprep.subr.bf16.mxu1 %v2469_v0  ;;  %2064 = vmatprep.subr.bf16.mxu0 %v2469_v0  ;;  %v2800_v30 = vsub.s32 %v695_v25, %v697_v26  ;;  %v2802_v37 = vsub.s32 %v727_v29, %v697_v26  ;;  %s1801_s29 = sshll.u32 %s471_s18, 4  ;;  %s2949_s29 = int_to_ptr.vmem [resolvable:$true] %s1801_s29 }
  0x96   : > { %2061 = vmatmul.mubr.msk.bf16.vlgmr.msra.gmra.mrb[0].mxu1 %vm511_vm1, %v487_v4  ;;  %2053 = vmatmul.mubr.msk.bf16.vlgmr.msra.gmra.mrb[0].mxu0 %vm511_vm1, %v487_v4 }
  0x97   : > { %2074 = vmatprep.mubr.msk.bf16.mxu1 %vm2470_vm0, %v2469_v0  ;;  %2068 = vmatprep.mubr.msk.bf16.mxu0 %vm2470_vm0, %v2469_v0 }
  0x98   : > { %2065 = vmatpush3.bf16.msra.mxu0 %v2237_v12 }
  0x99   : > { %2066 = vmatprep.subr.bf16.mxu0 %v2469_v0 }
  0x9c   : > { %2067 = vmatpush3.bf16.msra.mxu0 %v2238_v19 }
  0x9d   : > { %2078 = vmatprep.subr.bf16.mxu0 %v2469_v0 }
  0x9f   : > { %2069 = vmatmul.mubr.msk.bf16.vlgmr.msra.gmra.mrb[4].mxu0 %vm511_vm1, %v487_v4 }
  0xa0   : > { %2080 = vmatprep.mubr.msk.bf16.mxu0 %vm2470_vm0, %v2469_v0 }
 0x169   : > { %v612_v7 = vpop.f32.mrb[0].mxu1  ;;  %v549_v11 = vpop.f32.mrb[0].mxu0 }
 0x16a   : > { %v613_v9 = vadd.f32 %v1988_v6, %v612_v7  ;;  %v2062_v10 = vpop.f32.mrb[1].mxu1  ;;  %v2054_v14 = vpop.f32.mrb[1].mxu0  ;;  %v550_v16 = vadd.f32 %v1984_v8, %v549_v11 }
 0x16b   : > { %v615_v13 = vpop.f32.mrb[2].mxu1  ;;  %v552_v17 = vpop.f32.mrb[2].mxu0 }
 0x16c   : > { %838 = vrot.lane.b32.xlu1 %v613_v9, %s2471_s23  ;;  %832 = vrot.lane.b32.xlu0 %v613_v9, %s2472_s28  ;;  %v2063_v15 = vpop.f32.mrb[3].mxu1  ;;  %v2055_v18 = vpop.f32.mrb[3].mxu0 }
 0x170   : > { %835 = vrot.lane.b32.xlu0 %v613_v9, %s2473_s16  ;;  %682 = vrot.lane.b32.xlu1 %v550_v16, %s2472_s28 }
 0x174   : > { %685 = vrot.lane.b32.xlu0 %v550_v16, %s2473_s16  ;;  %688 = vrot.lane.b32.xlu1 %v550_v16, %s2471_s23 }
 0x1de   : > { %v839_v27 = vpop.permute.xlu1 %838  ;;  %v833_v28 = vpop.permute.xlu0 %832 }
 0x1df   : > { %v857_v31 = vcombine.low %v833_v28, %v839_v27  ;;  %v858_v32 = vcombine.high %v833_v28, %v839_v27 }
 0x1e1   : > { %v865_v38 = vrot.slane %v857_v31, %v2800_v30  ;;  %v872_v39 = vrot.slane %v858_v32, %v2800_v30 }
 0x1e2   : > { %v836_v33 = vpop.permute.xlu0 %835  ;;  %v683_v34 = vpop.permute.xlu1 %682 }
 0x1e3   : > { %v841_v35 = vcombine.low %v613_v9, %v836_v33  ;;  %v842_v36 = vcombine.high %v613_v9, %v836_v33 }
 0x1e5   : > { %v849_v40 = vrot.slane %v841_v35, %v2800_v30  ;;  %v856_v41 = vrot.slane %v842_v36, %v2800_v30 }
 0x1e6   : > { %v686_v42 = vpop.permute.xlu0 %685  ;;  %v689_v43 = vpop.permute.xlu1 %688 }
 0x1e7   : > { %v873_v44 = vcombine.low %v849_v40, %v865_v38  ;;  %v874_v45 = vcombine.high %v849_v40, %v865_v38  ;;  %v889_v46 = vcombine.low %v856_v41, %v872_v39  ;;  %v890_v47 = vcombine.high %v856_v41, %v872_v39 }
 0x1e8   : > { %v691_v48 = vcombine.low %v550_v16, %v686_v42  ;;  %v692_v49 = vcombine.high %v550_v16, %v686_v42  ;;  %v707_v50 = vcombine.low %v683_v34, %v689_v43  ;;  %v708_v51 = vcombine.high %v683_v34, %v689_v43 }
 0x1e9   : > { %v881_v52 = vrot.slane %v873_v44, %v2802_v37  ;;  %v888_v53 = vrot.slane %v874_v45, %v2802_v37  ;;  %v897_v54 = vrot.slane %v889_v46, %v2802_v37  ;;  %v904_v55 = vrot.slane %v890_v47, %v2802_v37 }
 0x1ea   : > { %v699_v56 = vrot.slane %v691_v48, %v2800_v30  ;;  %v706_v57 = vrot.slane %v692_v49, %v2800_v30  ;;  %v715_v58 = vrot.slane %v707_v50, %v2800_v30  ;;  %v722_v59 = vrot.slane %v708_v51, %v2800_v30 }
 0x1eb   : > { %v909_v60 = vcombine.low %v881_v52, %v888_v53  ;;  %v1998_v61 = vcombine.high %v881_v52, %v888_v53  ;;  %v925_v62 = vcombine.low %v897_v54, %v904_v55  ;;  %v1999_v63 = vcombine.high %v897_v54, %v904_v55 }
 0x1ec   : > { %v723_v1 = vcombine.low %v699_v56, %v715_v58  ;;  %v724_v2 = vcombine.high %v699_v56, %v715_v58  ;;  %v739_v3 = vcombine.low %v706_v57, %v722_v59  ;;  %v740_v4 = vcombine.high %v706_v57, %v722_v59  ;;  %v675_v59 = vpop.f32.mrb[4].mxu0 }
 0x1ed   : > { %v916_v5 = vrot.slane %v909_v60, %v2800_v30  ;;  %v924_v6 = vrot.slane %v1998_v61, %v2800_v30  ;;  %v932_v7 = vrot.slane %v925_v62, %v2800_v30  ;;  %v940_v8 = vrot.slane %v1999_v63, %v2800_v30  ;;  %v2070_v60 = vpop.f32.mrb[5].mxu0 }
 0x1ee   : > { %v731_v9 = vrot.slane %v723_v1, %v2802_v37  ;;  %v738_v10 = vrot.slane %v724_v2, %v2802_v37  ;;  %v747_v11 = vrot.slane %v739_v3, %v2802_v37  ;;  %v754_v12 = vrot.slane %v740_v4, %v2802_v37  ;;  %v678_v61 = vpop.f32.mrb[6].mxu0 }
 0x1ef   : > { %v941_v13 = vcombine.low %v916_v5, %v924_v6  ;;  %v957_v14 = vcombine.low %v932_v7, %v940_v8  ;;  %v942_v15 = vcombine.high %v916_v5, %v924_v6  ;;  %v958_v16 = vcombine.high %v932_v7, %v940_v8  ;;  %v2071_v62 = vpop.f32.mrb[7].mxu0 }
 0x1f0   : > { %v759_v17 = vcombine.low %v731_v9, %v738_v10  ;;  %v1996_v18 = vcombine.high %v731_v9, %v738_v10  ;;  %v775_v19 = vcombine.low %v747_v11, %v754_v12  ;;  %v1997_v20 = vcombine.high %v747_v11, %v754_v12 }
 0x1f1   : > { %v949_v21 = vrot.slane %v941_v13, %v2802_v37  ;;  %v965_v22 = vrot.slane %v957_v14, %v2802_v37  ;;  %v956_v29 = vrot.slane %v942_v15, %v2802_v37  ;;  %v972_v31 = vrot.slane %v958_v16, %v2802_v37 }
 0x1f2   : > { %v766_v23 = vrot.slane %v759_v17, %v2800_v30  ;;  %v774_v24 = vrot.slane %v1996_v18, %v2800_v30  ;;  %v782_v25 = vrot.slane %v775_v19, %v2800_v30  ;;  %v790_v26 = vrot.slane %v1997_v20, %v2800_v30  ;;  %v1992_v20 = vld [vmem:[%s3033_s6] ss:$0 sm:$0xff]  ;;  %s1788_s6 = scalar_lea.sflag [#allocation4], %s2745_s26 }
 0x1f3   : > { %v973_v27 = vcombine.low %v949_v21, %v965_v22  ;;  %v974_v28 = vcombine.high %v949_v21, %v965_v22  ;;  %v975_v41 = vcombine.low %v956_v29, %v972_v31  ;;  %v976_v42 = vcombine.high %v956_v29, %v972_v31 }
 0x1f4   : > { %v791_v32 = vcombine.low %v766_v23, %v774_v24  ;;  %v807_v33 = vcombine.low %v782_v25, %v790_v26  ;;  %v792_v43 = vcombine.high %v766_v23, %v774_v24  ;;  %v808_v44 = vcombine.high %v782_v25, %v790_v26 }
 0x1f5   : > { %v977_v34 = vpack.c.bf16 %v973_v27, %v973_v27  ;;  %v978_v35 = vpack.c.bf16 %v974_v28, %v974_v28  ;;  %v979_v47 = vpack.c.bf16 %v975_v41, %v975_v41  ;;  %v980_v48 = vpack.c.bf16 %v976_v42, %v976_v42 }
 0x1f6   : > { %v799_v36 = vrot.slane %v791_v32, %v2802_v37  ;;  %v815_v38 = vrot.slane %v807_v33, %v2802_v37  ;;  %v806_v51 = vrot.slane %v792_v43, %v2802_v37  ;;  %v822_v52 = vrot.slane %v808_v44, %v2802_v37 }
 0x1f7   : > { %v1136_v39 = vsel %vm1131_vm2, %v977_v34, 0  ;;  %v1182_v40 = vsel %vm1131_vm2, %v978_v35, 0  ;;  %v1228_v53 = vsel %vm1131_vm2, %v979_v47, 0  ;;  %v1274_v54 = vsel %vm1131_vm2, %v980_v48, 0 }
 0x1f8   : > { %2073 = vmatpush3.bf16.xpose.msra.mxu1 %v1136_v39  ;;  %2079 = vmatpush3.bf16.xpose.msra.mxu0 %v1182_v40  ;;  %v823_v45 = vcombine.low %v799_v36, %v815_v38  ;;  %v824_v46 = vcombine.high %v799_v36, %v815_v38  ;;  %v825_v55 = vcombine.low %v806_v51, %v822_v52 }
 0x1f9   : > { %2084 = vmatprep.subr.bf16.mxu1 %v2469_v0  ;;  %2090 = vmatprep.subr.bf16.mxu0 %v2469_v0  ;;  %v826_v56 = vcombine.high %v806_v51, %v822_v52  ;;  %v676_v21 = vadd.f32 %v1992_v20, %v675_v59 }
 0x1fa   : > { %v827_v49 = vpack.c.bf16 %v823_v45, %v823_v45  ;;  %v828_v50 = vpack.c.bf16 %v824_v46, %v824_v46  ;;  %v829_v57 = vpack.c.bf16 %v825_v55, %v825_v55 }
 0x1fb   : > { %v830_v58 = vpack.c.bf16 %v826_v56, %v826_v56 }
 0x1ff   : > { %2075 = vmatmul.mubr.msk.bf16.vlgmr.msra.gmra.mrb[4].mxu1 %vm1131_vm2, %v827_v49  ;;  %2081 = vmatmul.mubr.msk.bf16.vlgmr.msra.gmra.mrb[8].mxu0 %vm1131_vm2, %v828_v50 }
 0x200   : > { %2085 = vmatpush3.bf16.xpose.msra.mxu1 %v1228_v53  ;;  %2091 = vmatpush3.bf16.xpose.msra.mxu0 %v1274_v54 }
 0x201   : > { %2086 = vmatprep.mubr.msk.bf16.mxu1 %vm2470_vm0, %v2469_v0  ;;  %2092 = vmatprep.mubr.msk.bf16.mxu0 %vm2470_vm0, %v2469_v0 }
 0x202   : > { %2096 = vmatprep.subr.bf16.mxu1 %v2469_v0  ;;  %2102 = vmatprep.subr.bf16.mxu0 %v2469_v0 }
 0x207   : > { %2087 = vmatmul.mubr.msk.bf16.vlgmr.msra.gmra.mrb[8].mxu1 %vm1131_vm2, %v829_v57  ;;  %2093 = vmatmul.mubr.msk.bf16.vlgmr.msra.gmra.mrb[12].mxu0 %vm1131_vm2, %v830_v58 }
 0x208   : > { %2098 = vmatprep.mubr.msk.bf16.mxu1 %vm2470_vm0, %v2469_v0  ;;  %2104 = vmatprep.mubr.msk.bf16.mxu0 %vm2470_vm0, %v2469_v0 }
 0x2d2   : > { %v1172_v63 = vpop.f32.mrb[4].mxu1  ;;  %v1218_v1 = vpop.f32.mrb[8].mxu0 }
 0x2d3   : > { %v2076_v2 = vpop.f32.mrb[5].mxu1  ;;  %v2082_v3 = vpop.f32.mrb[9].mxu0  ;;  %v1316_v4 = vsel %vm1131_vm2, %v1172_v63, -inf  ;;  %v1319_v5 = vsel %vm1131_vm2, %v1218_v1, -inf }
 0x2d4   : > { %1317 = vmax.xlane.f32.xlu0 %v1316_v4  ;;  %v1175_v6 = vpop.f32.mrb[6].mxu1  ;;  %1320 = vmax.xlane.f32.xlu1 %v1319_v5  ;;  %v1221_v7 = vpop.f32.mrb[10].mxu0 }
 0x2d5   : > { %v2077_v8 = vpop.f32.mrb[7].mxu1  ;;  %v2083_v9 = vpop.f32.mrb[11].mxu0 }
 0x2da   : > { %v1264_v10 = vpop.f32.mrb[8].mxu1  ;;  %v1310_v11 = vpop.f32.mrb[12].mxu0 }
 0x2db   : > { %v2088_v12 = vpop.f32.mrb[9].mxu1  ;;  %v2094_v13 = vpop.f32.mrb[13].mxu0  ;;  %v1322_v14 = vsel %vm1131_vm2, %v1264_v10, -inf  ;;  %v1325_v19 = vsel %vm1131_vm2, %v1310_v11, -inf }
 0x2dc   : > { %1323 = vmax.xlane.f32.xlu0 %v1322_v14  ;;  %v1267_v15 = vpop.f32.mrb[10].mxu1  ;;  %v1313_v16 = vpop.f32.mrb[14].mxu0 }
 0x2dd   : > { %v2089_v17 = vpop.f32.mrb[11].mxu1  ;;  %v2095_v18 = vpop.f32.mrb[15].mxu0 }
 0x2e0   : > { %1326 = vmax.xlane.f32.xlu0 %v1325_v19 }
 0x2e5   : > { %982 = vrot.lane.b32.xlu1 %v676_v21, %s2472_s28  ;;  %s2017_s28 = sshll.u32 %s3034_s19, 7 }
 0x2e6   : > { %s2947_s25 = scalar_lea.hbm %s3036_s22, %s2017_s28 }
 0x361   : > { %v1318_v22 = vpop.xlane.xlu0 %1317  ;;  %v1321_v23 = vpop.xlane.xlu1 %1320 }
 0x362   : > { %v1328_v24 = vsub.f32 %v1172_v63, %v1318_v22  ;;  %v1329_v25 = vsub.f32 %v1218_v1, %v1321_v23 }
 0x364   : > { %v1332_v26 = vmul.f32 1.442695, %v1328_v24  ;;  %v1334_v27 = vmul.f32 1.442695, %v1329_v25 }
 0x365   : > { %v983_v44 = vpop.permute.xlu1 %982 }
 0x366   : > { %2241 = vpow2.f32 %v1332_v26 }
 0x367   : > { %2243 = vpow2.f32 %v1334_v27 }
 0x369   : > { %v1324_v33 = vpop.xlane.xlu0 %1323 }
 0x36a   : > { %v1330_v35 = vsub.f32 %v1264_v10, %v1324_v33 }
 0x36c   : > { %v1336_v38 = vmul.f32 1.442695, %v1330_v35 }
 0x36d   : > { %v1327_v34 = vpop.xlane.xlu0 %1326 }
 0x36e   : > { %v1331_v36 = vsub.f32 %v1310_v11, %v1327_v34  ;;  %2245 = vpow2.f32 %v1336_v38 }
 0x370   : > { %v2864_v28 = vpop.eup %2241  ;;  %v1338_v39 = vmul.f32 1.442695, %v1331_v36 }
 0x371   : > { %v2866_v29 = vpop.eup %2243  ;;  %v1340_v31 = vsel %vm1131_vm2, %v2864_v28, 0.0 }
 0x372   : > { %1341 = vadd.xlane.f32.xlu1 %v1340_v31  ;;  %v1343_v32 = vsel %vm1131_vm2, %v2866_v29, 0.0  ;;  %2247 = vpow2.f32 %v1338_v39 }
 0x373   : > { %1344 = vadd.xlane.f32.xlu0 %v1343_v32 }
 0x378   : > { %v2874_v40 = vpop.eup %2245 }
 0x379   : > { %v1346_v42 = vsel %vm1131_vm2, %v2874_v40, 0.0 }
 0x37c   : > { %v2876_v41 = vpop.eup %2247 }
 0x37d   : > { %v1349_v43 = vsel %vm1131_vm2, %v2876_v41, 0.0 }
 0x383   : > { %988 = vrot.lane.b32.xlu1 %v676_v21, %s2471_s23  ;;  %s3035_s23 = sld [smem:[#allocation19_spill]] }
 0x389   : > { %985 = vrot.lane.b32.xlu0 %v676_v21, %s2473_s16 }
 0x3a7   : > { %1347 = vadd.xlane.f32.xlu1 %v1346_v42 }
 0x3a8   : > { %1350 = vadd.xlane.f32.xlu0 %v1349_v43 }
 0x3ff   : > { %v1342_v45 = vpop.xlane.xlu1 %1341 }
 0x400   : > { %v1345_v46 = vpop.xlane.xlu0 %1344  ;;  %2249 = vrcp.f32 %v1342_v45 }
 0x401   : > { %2251 = vrcp.f32 %v1345_v46 }
 0x403   : > { %v989_v47 = vpop.permute.xlu1 %988 }
 0x404   : > { %v1007_v48 = vcombine.low %v983_v44, %v989_v47  ;;  %v1008_v49 = vcombine.high %v983_v44, %v989_v47  ;;  %v986_v50 = vpop.permute.xlu0 %985 }
 0x405   : > { %v991_v51 = vcombine.low %v676_v21, %v986_v50  ;;  %v992_v52 = vcombine.high %v676_v21, %v986_v50 }
 0x406   : > { %v1015_v53 = vrot.slane %v1007_v48, %v2800_v30  ;;  %v1022_v54 = vrot.slane %v1008_v49, %v2800_v30 }
 0x407   : > { %v999_v55 = vrot.slane %v991_v51, %v2800_v30  ;;  %v1006_v56 = vrot.slane %v992_v52, %v2800_v30 }
 0x409   : > { %v1023_v57 = vcombine.low %v999_v55, %v1015_v53  ;;  %v1024_v58 = vcombine.high %v999_v55, %v1015_v53  ;;  %v1039_v59 = vcombine.low %v1006_v56, %v1022_v54  ;;  %v1040_v60 = vcombine.high %v1006_v56, %v1022_v54 }
 0x40a   : > { %v2250_v16 = vpop.eup %2249 }
 0x40b   : > { %v1031_v61 = vrot.slane %v1023_v57, %v2802_v37  ;;  %v1038_v62 = vrot.slane %v1024_v58, %v2802_v37  ;;  %v1047_v63 = vrot.slane %v1039_v59, %v2802_v37  ;;  %v1054_v1 = vrot.slane %v1040_v60, %v2802_v37  ;;  %v2252_v19 = vpop.eup %2251 }
 0x40c   : > { %v1356_v24 = vmul.f32 %v2250_v16, %v2864_v28  ;;  %v1357_v25 = vmul.f32 %v2252_v19, %v2866_v29 }
 0x40d   : > { %v1059_v2 = vcombine.low %v1031_v61, %v1038_v62  ;;  %v2000_v3 = vcombine.high %v1031_v61, %v1038_v62  ;;  %v1075_v4 = vcombine.low %v1047_v63, %v1054_v1  ;;  %v2001_v5 = vcombine.high %v1047_v63, %v1054_v1 }
 0x40e   : > { %v1360_v35 = vpack.c.bf16 %v1356_v24, %v1356_v24  ;;  %v1361_v36 = vpack.c.bf16 %v1357_v25, %v1357_v25 }
 0x40f   : > { %v1066_v6 = vrot.slane %v1059_v2, %v2800_v30  ;;  %v1074_v7 = vrot.slane %v2000_v3, %v2800_v30  ;;  %v1082_v8 = vrot.slane %v1075_v4, %v2800_v30  ;;  %v1090_v9 = vrot.slane %v2001_v5, %v2800_v30 }
 0x411   : > { %v1091_v10 = vcombine.low %v1066_v6, %v1074_v7  ;;  %v1092_v11 = vcombine.high %v1066_v6, %v1074_v7  ;;  %v1107_v12 = vcombine.low %v1082_v8, %v1090_v9  ;;  %v1108_v13 = vcombine.high %v1082_v8, %v1090_v9 }
 0x413   : > { %v1099_v14 = vrot.slane %v1091_v10, %v2802_v37  ;;  %v1106_v15 = vrot.slane %v1092_v11, %v2802_v37  ;;  %v1115_v17 = vrot.slane %v1107_v12, %v2802_v37  ;;  %v1122_v18 = vrot.slane %v1108_v13, %v2802_v37  ;;  %v2239_v11 = vld [vmem:[#allocation8] sm:$0xff]  }
 0x415   : > { %v1123_v20 = vcombine.low %v1099_v14, %v1115_v17  ;;  %v1124_v21 = vcombine.high %v1099_v14, %v1115_v17  ;;  %v1125_v22 = vcombine.low %v1106_v15, %v1122_v18  ;;  %v1126_v23 = vcombine.high %v1106_v15, %v1122_v18 }
 0x417   : > { %v1127_v26 = vpack.c.bf16 %v1123_v20, %v1123_v20  ;;  %v1128_v27 = vpack.c.bf16 %v1124_v21, %v1124_v21  ;;  %v1129_v33 = vpack.c.bf16 %v1125_v22, %v1125_v22  ;;  %v1130_v34 = vpack.c.bf16 %v1126_v23, %v1126_v23  ;;  %v2240_v20 = vld [vmem:[#allocation8 + $0x8] sm:$0xff]  }
 0x419   : > { %v1369_v31 = vsel %vm1367_vm3, %v1127_v26, 0  ;;  %v1415_v32 = vsel %vm1367_vm3, %v1128_v27, 0  ;;  %v1461_v28 = vsel %vm1367_vm3, %v1129_v33, 0  ;;  %v1507_v29 = vsel %vm1367_vm3, %v1130_v34, 0 }
 0x41a   : > { %2097 = vmatpush3.bf16.msra.mxu1 %v1369_v31  ;;  %2103 = vmatpush3.bf16.msra.mxu0 %v1415_v32 }
 0x41b   : > { %2108 = vmatprep.subr.bf16.mxu1 %v2469_v0  ;;  %2114 = vmatprep.subr.bf16.mxu0 %v2469_v0 }
 0x41d   : > { %2099 = vmatmul.mubr.msk.bf16.vlgmr.msra.gmra.mrb[12].mxu1 %vm1131_vm2, %v1360_v35  ;;  %2105 = vmatmul.mubr.msk.bf16.vlgmr.msra.gmra.mrb[16].mxu0 %vm1131_vm2, %v1361_v36 }
 0x41e   : > { %2109 = vmatpush3.bf16.msra.mxu1 %v1461_v28  ;;  %2115 = vmatpush3.bf16.msra.mxu0 %v1507_v29 }
 0x41f   : > { %2110 = vmatprep.mubr.msk.bf16.mxu1 %vm2470_vm0, %v2469_v0  ;;  %2116 = vmatprep.mubr.msk.bf16.mxu0 %vm2470_vm0, %v2469_v0 }
 0x420   : > { %2120 = vmatprep.subr.bf16.mxu1 %v2469_v0 }
 0x434   : > { %v1348_v38 = vpop.xlane.xlu1 %1347 }
 0x435   : > { %2253 = vrcp.f32 %v1348_v38  ;;  %v1351_v39 = vpop.xlane.xlu0 %1350 }
 0x436   : > { %2255 = vrcp.f32 %v1351_v39 }
 0x43f   : > { %v2254_v42 = vpop.eup %2253 }
 0x440   : > { %v2256_v43 = vpop.eup %2255  ;;  %v1358_v44 = vmul.f32 %v2254_v42, %v2874_v40 }
 0x441   : > { %v1359_v45 = vmul.f32 %v2256_v43, %v2876_v41 }
 0x442   : > { %v1362_v46 = vpack.c.bf16 %v1358_v44, %v1358_v44 }
 0x443   : > { %v1363_v47 = vpack.c.bf16 %v1359_v45, %v1359_v45 }
 0x444   : > { %2111 = vmatmul.mubr.msk.bf16.vlgmr.msra.gmra.mrb[16].mxu1 %vm1131_vm2, %v1362_v46 }
 0x445   : > { %2117 = vmatmul.mubr.msk.bf16.vlgmr.msra.gmra.mrb[20].mxu0 %vm1131_vm2, %v1363_v47  ;;  %2124 = vmatprep.mubr.msk.bf16.mxu1 %vm2470_vm0, %v2469_v0 }
 0x446   : > { %2121 = vmatpush3.bf16.msra.mxu1 %v2239_v11 }
 0x447   : > { %2122 = vmatprep.subr.bf16.mxu1 %v2469_v0 }
 0x44a   : > { %2123 = vmatpush3.bf16.msra.mxu1 %v2240_v20 }
 0x4f0   : > { %v1405_v48 = vpop.f32.mrb[12].mxu1  ;;  %v1451_v49 = vpop.f32.mrb[16].mxu0 }
 0x4f1   : > { %v2100_v50 = vpop.f32.mrb[13].mxu1  ;;  %v2106_v51 = vpop.f32.mrb[17].mxu0 }
 0x4f2   : > { %v1408_v52 = vpop.f32.mrb[14].mxu1  ;;  %v1454_v53 = vpop.f32.mrb[18].mxu0 }
 0x4f3   : > { %v2101_v54 = vpop.f32.mrb[15].mxu1  ;;  %v2107_v55 = vpop.f32.mrb[19].mxu0 }
 0x517   : > { %v1497_v40 = vpop.f32.mrb[16].mxu1 }
 0x518   : > { %v1549_v56 = vcombine.low %v1405_v48, %v1497_v40  ;;  %v1550_v41 = vcombine.high %v1405_v48, %v1497_v40  ;;  %v1543_v57 = vpop.f32.mrb[20].mxu0  ;;  %v2112_v58 = vpop.f32.mrb[17].mxu1 }
 0x519   : > { %v1565_v59 = vcombine.low %v1451_v49, %v1543_v57  ;;  %v1566_v60 = vcombine.high %v1451_v49, %v1543_v57  ;;  %v2118_v61 = vpop.f32.mrb[21].mxu0  ;;  %v1500_v62 = vpop.f32.mrb[18].mxu1  ;;  %v2015_v49 = vld [vmem:[%s3035_s23] ss:$0 sm:$0xff] }
 0x51a   : > { %v1557_v63 = vrot.slane %v1549_v56, %v2800_v30  ;;  %v1564_v1 = vrot.slane %v1550_v41, %v2800_v30  ;;  %v1546_v2 = vpop.f32.mrb[22].mxu0  ;;  %v2113_v3 = vpop.f32.mrb[19].mxu1 }
 0x51b   : > { %v1573_v4 = vrot.slane %v1565_v59, %v2800_v30  ;;  %v1580_v5 = vrot.slane %v1566_v60, %v2800_v30  ;;  %v2119_v6 = vpop.f32.mrb[23].mxu0 }
 0x51d   : > { %v1581_v7 = vcombine.low %v1557_v63, %v1573_v4  ;;  %v1582_v8 = vcombine.high %v1557_v63, %v1573_v4  ;;  %v1597_v9 = vcombine.low %v1564_v1, %v1580_v5  ;;  %v1598_v10 = vcombine.high %v1564_v1, %v1580_v5 }
 0x51f   : > { %v1589_v12 = vrot.slane %v1581_v7, %v2802_v37  ;;  %v1596_v13 = vrot.slane %v1582_v8, %v2802_v37  ;;  %v1605_v14 = vrot.slane %v1597_v9, %v2802_v37  ;;  %v1612_v15 = vrot.slane %v1598_v10, %v2802_v37 }
 0x521   : > { %v1617_v16 = vcombine.low %v1589_v12, %v1596_v13  ;;  %v2010_v17 = vcombine.high %v1589_v12, %v1596_v13  ;;  %v1633_v18 = vcombine.low %v1605_v14, %v1612_v15  ;;  %v2011_v19 = vcombine.high %v1605_v14, %v1612_v15 }
 0x523   : > { %v1624_v21 = vrot.slane %v1617_v16, %v2800_v30  ;;  %v1632_v22 = vrot.slane %v2010_v17, %v2800_v30  ;;  %v1640_v23 = vrot.slane %v1633_v18, %v2800_v30  ;;  %v1648_v24 = vrot.slane %v2011_v19, %v2800_v30 }
 0x525   : > { %v1650_v25 = vcombine.high %v1624_v21, %v1632_v22  ;;  %v1666_v26 = vcombine.high %v1640_v23, %v1648_v24  ;;  %v1649_v27 = vcombine.low %v1624_v21, %v1632_v22  ;;  %v1665_v31 = vcombine.low %v1640_v23, %v1648_v24 }
 0x527   : > { %v1664_v0 = vrot.slane %v1650_v25, %v2802_v37  ;;  %v1680_v32 = vrot.slane %v1666_v26, %v2802_v37  ;;  %v1657_v33 = vrot.slane %v1649_v27, %v2802_v37  ;;  %v1673_v34 = vrot.slane %v1665_v31, %v2802_v37 }
 0x529   : > { %v1683_v35 = vcombine.low %v1664_v0, %v1680_v32  ;;  %v1682_v36 = vcombine.high %v1657_v33, %v1673_v34  ;;  %v1684_v28 = vcombine.high %v1664_v0, %v1680_v32  ;;  %v1681_v29 = vcombine.low %v1657_v33, %v1673_v34 }
 0x52b   : > { %1690 = vrot.lane.b32.xlu1 %v1683_v35, %s2476_s30  ;;  %1686 = vrot.lane.b32.xlu0 %v1682_v36, %s2477_s12  ;;  %s2371_s30 = scalar_lea.vmem %s2949_s29, 128  ;;  %s2479_s12 = smov [#allocation10]  }
 0x52c   : > { %p2372_p11 = scmp.ne.s32.totalorder %s2949_s29, %s2371_s30 }
 0x52e   : > { %p2373_p6 = pnand %p2372_p11, %p2690_p10 }
 0x52f   : > { %1694 = vrot.lane.b32.xlu1 %v1684_v28, %s2478_s17  ;;  %s2375_s17 = sshll.u32 %s2479_s12, 4  ;;  %s2376_s17 = int_to_ptr.vmem [resolvable:$false] %s2375_s17 }
 0x530   : > { %p2374_p3 = pneg %p2373_p6  ;;  %s2377_s19 = scalar_lea.vmem %s2376_s17, 256 }
 0x531   : > { %p2378_p5 = scmp.lt.s32.totalorder %s2949_s29, %s2376_s17  ;;  %p2379_p7 = scmp.lt.s32.totalorder %s2377_s19, %s2371_s30 }
 0x533   : > { %p2380_p9 = por %p2379_p7, %p2378_p5 }
 0x535   : > { %p2381_p0 = pnand %p2380_p9, %p2374_p3 }
 0x59d   : > { %v1691_v30 = vpop.permute.xlu1 %1690  ;;  %v1687_v38 = vpop.permute.xlu0 %1686 }
 0x59e   : > { %v1697_v39 = vsel %vm1131_vm2, %v1681_v29, %v1687_v38 }
 0x59f   : > { %v1699_v37 = vsel %vm1698_vm4, %v1697_v39, %v1691_v30 }
 0x5a1   : > { %v1695_v42 = vpop.permute.xlu1 %1694 }
 0x5a2   : > { %v1701_v43 = vsel %vm1700_vm5, %v1699_v37, %v1695_v42 }
 0x5a3   : > { %v1702_v44 = vpack.c.bf16 %v1701_v43, %v1701_v43 }
 0x5a5   : > { %2125 = vmatmul.mubr.msk.bf16.vlgmr.msra.gmra.mrb[20].mxu1 %vm511_vm1, %v1702_v44 }
 0x678   : > { %v1756_v45 = vpop.f32.mrb[20].mxu1 }
 0x679   : > { %1766 = vst.msk [vmem:[%s471_s18] sm:$0xff] %vm511_vm1, %v1756_v45  ;;  %v2126_v46 = vpop.f32.mrb[21].mxu1 }
 0x67a   : > { %v1759_v47 = vpop.f32.mrb[22].mxu1 }
 0x67b   : > { %v2127_v48 = vpop.f32.mrb[23].mxu1 }
 0x680   : > { %v1777_v50 = vld [vmem:[%s471_s18] sm:$0xff] }
 0x681   : > { %v1785_v51 = vadd.f32 %v2015_v49, %v1777_v50 }
 0x683   : > { %1786 = vst.msk [vmem:[%s471_s18] sm:$0xff] %vm511_vm1, %v1785_v51 }
 0x684   : > { %2384 = shalt.err (!%p2381_p0)
}
 0x685   : > { %s2385_s26 = scalar_lea.hbm %s2947_s25, 128  ;;  %s2389_s27 = scalar_lea.hbm %s3036_s22, 256 }
 0x686   : > { %p2386_p4 = scmp.ne.s32.totalorder %s2947_s25, %s2385_s26  ;;  %p2390_p1 = scmp.lt.u32.totalorder %s2947_s25, %s3036_s22 }
 0x687   : > { %p2391_p12 = scmp.lt.u32.totalorder %s2389_s27, %s2385_s26  ;;  %p2393_p11 = scmp.lt.u32.totalorder %s2385_s26, %s2947_s25 }
 0x688   : > { %p2387_p2 = pnand %p2386_p4, %p2690_p10 }
 0x689   : > { %p2392_p13 = por %p2391_p12, %p2390_p1 }
 0x68a   : > { %p2388_p8 = pneg %p2387_p2 }
 0x68b   : > { %p2394_p6 = por %p2393_p11, %p2392_p13 }
 0x68d   : > { %p2395_p3 = pnand %p2394_p6, %p2388_p8 }
 0x68f   : > { %2398 = shalt.err (!%p2395_p3)
}
 0x690   : > { %2142 = dma.vmem_to_hbm [thread:$0]  (%p2690_p10), %s2949_s29, 128, %s2947_s25, %s1788_s6  }
 0x691 PF: > { %s3037_s28 = sld [smem:[#allocation15_spill]]  ;;  %s3038_s9 = sld [smem:[#allocation17_spill]] }
 0x692   : > { %p3040_p7 = scmp.ge.s32.totalorder %s2461_s14, 2 }
 0x697   : > { %s1813_s16 = sand.u32 1, %s3037_s28   ;;  %p3039_p5 = scmp.ne.s32.totalorder %s3038_s9, 0 }
 0x698   : > { %s1814_s30 = scalar_lea.sflag [#allocation4], %s1813_s16 }
 0x699   : > { %p2159_p9 = pnand %p3040_p7, %p3039_p5 }
 0x69b   : > { %2436 = dma.done.wait (!%p2159_p9), %s1814_s30, 128  }
 0x69c   : > { %2438 = vsyncadd (!%p2159_p9), %s1814_s30, 4294967168  ;;  %s27_s14 = sadd.s32 1, %s2461_s14   ;;  %s3041_s30 = smov %s2445_s10 }
 0x69d   : > { %p24_p0 = scmp.ge.s32.totalorder %s27_s14, 4   ;;  %s3042_s10 = smov %s2449_s11 }
 0x69e   : > { %s3043_s11 = smov %s2702_s15  ;;  %s3044_s12 = smov %s2457_s13 }
 0x69f   : > { %s3045_s13 = smov %s3047_s24  ;;  %26 = sbr.rel (!%p24_p0) target bundleno = 12 (0xc), region = 140 }
 0x6a6   :  { %1819 = vsyncpa [#allocation3], 1 }
 0x6a7   :  { %1821 = vsyncpa [#allocation3 + $0x1], 1 }
 0x6a8   :  { %1822 = vsyncpa [#allocation6], 1 }
 0x6a9   :  { %1823 = vsyncpa [#allocation9], 1 }
 0x6aa   :  { %1824 = vsyncpa [#allocation4], 1 }
 0x6ab   :  { %1826 = vsyncpa [#allocation4 + $0x1], 1 }

</bundles_post_ra>
